<compile_context>
chip_gen: v6e
topology: v6e:2x2x1
jax: 0.10.0
libtpu: 0.0.40
codegen_flags: <defaults>
</compile_context>

<pallas_src>
import functools

import jax
import jax.numpy as jnp
from jax.experimental import pallas as pl
from jax.experimental.pallas import tpu as pltpu

HIDDEN = 128       # trunk width (matches nn.Linear(obs_dim, 128))
TM_MAX = 1024      # max rows per grid step (sweepable 1024-4096; VMEM-safe everywhere)
TINY_BATCH = 256   # at/below this, run a single block (latency path)


def _round_up(n, m):
    return (n + m - 1) // m * m


def _a2c_kernel(x_ref, w1_ref, b1_ref, wh_ref, bh_ref, out_ref):
    # Shared trunk: Linear(obs_dim, 128) + ReLU.
    # x arrives as f32 (one minimal HBM stream) and is cast to bf16 on the VPU
    # so the MXU runs at bf16 rate; accumulate in f32, bias + ReLU in f32.
    x = x_ref[...].astype(jnp.bfloat16)
    h = jnp.dot(x, w1_ref[...], preferred_element_type=jnp.float32)
    feats = jnp.maximum(h + b1_ref[...], 0.0)
    # Fused heads: one narrow (TM, head_w) matmul covering policy + value.
    out_ref[...] = (
        jnp.dot(feats.astype(jnp.bfloat16), wh_ref[...],
                preferred_element_type=jnp.float32)
        + bh_ref[...]
    )


def _pick_tiles(batch):
    """Pick (tm, padded_batch).  Large batches get big tiles but always >= 2
    grid steps so v7x's two TensorCores both get work; tiny batches run as a
    single sublane-aligned block."""
    b8 = _round_up(batch, 8)
    if b8 <= TINY_BATCH:
        return b8, b8
    n_steps = max(2, pl.cdiv(b8, TM_MAX))
    tm = _round_up(pl.cdiv(b8, n_steps), 8)
    return tm, tm * n_steps


def prepare_params(w1, b1, wp, bp, wv, bv):
    """One-time parameter prep (hoisted out of the per-call forward):
    fuse the policy/value heads into a narrow lane slab and cast the matmul
    weights to bf16.  Columns [0:action_dim] -> policy logits, column
    [action_dim] -> value, remaining columns zero padding."""
    assert w1.shape[1] == HIDDEN and wp.shape[0] == HIDDEN and wv.shape == (HIDDEN, 1)
    action_dim = wp.shape[1]
    head_w = max(8, _round_up(action_dim + 1, 8))   # value column always fits
    wh = jnp.zeros((HIDDEN, head_w), jnp.float32)
    wh = wh.at[:, :action_dim].set(wp)
    wh = wh.at[:, action_dim:action_dim + 1].set(wv)
    bh = jnp.zeros((1, head_w), jnp.float32)
    bh = bh.at[:, :action_dim].set(bp)
    bh = bh.at[:, action_dim:action_dim + 1].set(bv)
    return (w1.astype(jnp.bfloat16),
            b1.astype(jnp.float32),
            wh.astype(jnp.bfloat16),
            bh.astype(jnp.float32))


@functools.partial(jax.jit, static_argnames=("action_dim",))
def a2c_forward(x, w1, b1, wh, bh, *, action_dim):
    batch, obs_dim = x.shape
    head_w = wh.shape[1]

    tm, b_pad = _pick_tiles(batch)
    if b_pad != batch:
        x = jnp.pad(x, ((0, b_pad - batch), (0, 0)))
    grid = (b_pad // tm,)

    flops = 2 * b_pad * (obs_dim * HIDDEN + HIDDEN * head_w)
    bytes_accessed = (
        4 * b_pad * obs_dim                    # x (f32 in, cast in-kernel)
        + 2 * obs_dim * HIDDEN + 4 * HIDDEN    # trunk W (bf16), b (f32)
        + 2 * HIDDEN * head_w + 4 * head_w     # fused head W (bf16), b (f32)
        + 4 * b_pad * head_w                   # narrow output slab (f32)
    )

    out = pl.pallas_call(
        _a2c_kernel,
        out_shape=jax.ShapeDtypeStruct((b_pad, head_w), jnp.float32),
        grid=grid,
        in_specs=[
            pl.BlockSpec((tm, obs_dim), lambda i: (i, 0)),       # x tile
            pl.BlockSpec((obs_dim, HIDDEN), lambda i: (0, 0)),   # trunk W (VMEM-resident)
            pl.BlockSpec((1, HIDDEN), lambda i: (0, 0)),         # trunk b (resident)
            pl.BlockSpec((HIDDEN, head_w), lambda i: (0, 0)),    # fused head W (resident)
            pl.BlockSpec((1, head_w), lambda i: (0, 0)),         # fused head b (resident)
        ],
        out_specs=pl.BlockSpec((tm, head_w), lambda i: (i, 0)),
        compiler_params=pltpu.CompilerParams(
            dimension_semantics=("parallel",)),
        cost_estimate=pl.CostEstimate(
            flops=flops, transcendentals=0, bytes_accessed=bytes_accessed),
    )(x, w1, b1, wh, bh)

    # slice logits / value out of the narrow output slab (padded rows dropped)
    action = out[:batch, :action_dim]
    value = out[:batch, action_dim:action_dim + 1]
    return action, value


def init_params(key, obs_dim, action_dim, hidden=HIDDEN):
    """PyTorch-style nn.Linear init: U(-1/sqrt(fan_in), 1/sqrt(fan_in))."""
    ks = jax.random.split(key, 6)

    def lin(kw, kb, fan_in, fan_out):
        bound = 1.0 / jnp.sqrt(jnp.float32(fan_in))
        w = jax.random.uniform(kw, (fan_in, fan_out), jnp.float32, -bound, bound)
        b = jax.random.uniform(kb, (1, fan_out), jnp.float32, -bound, bound)
        return w, b

    w1, b1 = lin(ks[0], ks[1], obs_dim, hidden)
    wp, bp = lin(ks[2], ks[3], hidden, action_dim)
    wv, bv = lin(ks[4], ks[5], hidden, 1)
    return w1, b1, wp, bp, wv, bv


def a2c_ref(x, w1, b1, wp, bp, wv, bv):
    feats = jnp.maximum(x @ w1 + b1, 0.0)
    return feats @ wp + bp, feats @ wv + bv


if __name__ == "__main__":
    obs_dim, action_dim, batch = 16, 4, 8

    key = jax.random.PRNGKey(0)
    k_x, k_p = jax.random.split(key)
    x = jax.random.normal(k_x, (batch, obs_dim), dtype=jnp.float32)
    raw_params = init_params(k_p, obs_dim, action_dim)
    params = prepare_params(*raw_params)          # one-time head fusion + bf16 cast

    action, value = a2c_forward(x, *params, action_dim=action_dim)
    jax.block_until_ready((action, value))

    # correctness check against plain-JAX f32 reference of the PyTorch forward
    # (tolerance relaxed because the kernel uses bf16 MXU operands with f32 acc)
    action_ref, value_ref = a2c_ref(x, *raw_params)
    assert action.shape == (batch, action_dim)
    assert value.shape == (batch, 1)
    assert jnp.allclose(action, action_ref, atol=5e-2, rtol=5e-2)
    assert jnp.allclose(value, value_ref, atol=5e-2, rtol=5e-2)

    # sanity-check the gridded path (>= 2 grid steps, padded rows sliced off)
    xb = jax.random.normal(k_x, (300, obs_dim), dtype=jnp.float32)
    ab, vb = a2c_forward(xb, *params, action_dim=action_dim)
    jax.block_until_ready((ab, vb))
    ab_ref, vb_ref = a2c_ref(xb, *raw_params)
    assert ab.shape == (300, action_dim) and vb.shape == (300, 1)
    assert jnp.allclose(ab, ab_ref, atol=5e-2, rtol=5e-2)
    assert jnp.allclose(vb, vb_ref, atol=5e-2, rtol=5e-2)

    print("KERNEL_OK")
</pallas_src>

<mosaic_0001>
module attributes {stable_mosaic.version = 11 : i64} {
  func.func @_a2c_kernel(%arg0: i32, %arg1: memref<8x16xf32, #tpu.memory_space<vmem>>, %arg2: memref<16x128xbf16, #tpu.memory_space<vmem>>, %arg3: memref<1x128xf32, #tpu.memory_space<vmem>>, %arg4: memref<128x8xbf16, #tpu.memory_space<vmem>>, %arg5: memref<1x8xf32, #tpu.memory_space<vmem>>, %arg6: memref<8x8xf32, #tpu.memory_space<vmem>>) attributes {dimension_semantics = [#tpu.dimension_semantics<parallel>], iteration_bounds = array<i64: 1>, scalar_prefetch = 0 : i64, scratch_operands = 0 : i64, tpu.core_type = #tpu.core_type<tc>, window_params = [{transform_indices = @transform_0, window_bounds = array<i64: 8, 16>}, {pipeline_mode = #tpu.pipeline_mode<synchronous>, transform_indices = @transform_1, window_bounds = array<i64: 16, 128>}, {pipeline_mode = #tpu.pipeline_mode<synchronous>, transform_indices = @transform_2, window_bounds = array<i64: 1, 128>}, {pipeline_mode = #tpu.pipeline_mode<synchronous>, transform_indices = @transform_3, window_bounds = array<i64: 128, 8>}, {pipeline_mode = #tpu.pipeline_mode<synchronous>, transform_indices = @transform_4, window_bounds = array<i64: 1, 8>}, {transform_indices = @transform_5, window_bounds = array<i64: 8, 8>}]} {
    %c0 = arith.constant 0 : index
    %c0_0 = arith.constant 0 : index
    %0 = vector.load %arg1[%c0, %c0_0] : memref<8x16xf32, #tpu.memory_space<vmem>>, vector<8x16xf32>
    %1 = arith.truncf %0 : vector<8x16xf32> to vector<8x16xbf16>
    %c0_1 = arith.constant 0 : index
    %c0_2 = arith.constant 0 : index
    %2 = vector.load %arg2[%c0_1, %c0_2] : memref<16x128xbf16, #tpu.memory_space<vmem>>, vector<16x128xbf16>
    %cst = arith.constant dense<0.000000e+00> : vector<8x128xf32>
    %3 = tpu.matmul %1, %2, %cst {dimension_numbers = #tpu.dot_dimension_numbers<[1], [0], [0], [1], [0, 0, 1, 1], [], []>} : vector<8x16xbf16>, vector<16x128xbf16>, vector<8x128xf32> -> vector<8x128xf32>
    %c0_3 = arith.constant 0 : index
    %c0_4 = arith.constant 0 : index
    %4 = vector.load %arg3[%c0_3, %c0_4] : memref<1x128xf32, #tpu.memory_space<vmem>>, vector<1x128xf32>
    %5 = vector.broadcast %4 : vector<1x128xf32> to vector<8x128xf32>
    %6 = arith.addf %3, %5 : vector<8x128xf32>
    %cst_5 = arith.constant 0.000000e+00 : f32
    %7 = vector.broadcast %cst_5 : f32 to vector<8x128xf32>
    %8 = arith.maximumf %6, %7 : vector<8x128xf32>
    %9 = arith.truncf %8 : vector<8x128xf32> to vector<8x128xbf16>
    %c0_6 = arith.constant 0 : index
    %c0_7 = arith.constant 0 : index
    %10 = vector.load %arg4[%c0_6, %c0_7] : memref<128x8xbf16, #tpu.memory_space<vmem>>, vector<128x8xbf16>
    %cst_8 = arith.constant dense<0.000000e+00> : vector<8x8xf32>
    %11 = tpu.matmul %9, %10, %cst_8 {dimension_numbers = #tpu.dot_dimension_numbers<[1], [0], [0], [1], [0, 0, 1, 1], [], []>} : vector<8x128xbf16>, vector<128x8xbf16>, vector<8x8xf32> -> vector<8x8xf32>
    %c0_9 = arith.constant 0 : index
    %c0_10 = arith.constant 0 : index
    %12 = vector.load %arg5[%c0_9, %c0_10] : memref<1x8xf32, #tpu.memory_space<vmem>>, vector<1x8xf32>
    %13 = vector.broadcast %12 : vector<1x8xf32> to vector<8x8xf32>
    %14 = arith.addf %11, %13 : vector<8x8xf32>
    %c0_11 = arith.constant 0 : index
    %c0_12 = arith.constant 0 : index
    %15 = vector.load %arg6[%c0_11, %c0_12] : memref<8x8xf32, #tpu.memory_space<vmem>>, vector<8x8xf32>
    tpu.vector_store %arg6[%c0_11, %c0_12], %14 {strides = array<i32>} : memref<8x8xf32, #tpu.memory_space<vmem>>, vector<8x8xf32>,
    return
  }
  func.func @transform_0(%arg0: i32) -> (i32, i32) {
    %c0_i32 = arith.constant 0 : i32
    %c0_i32_0 = arith.constant 0 : i32
    return %arg0, %c0_i32 : i32, i32
  }
  func.func @transform_1(%arg0: i32) -> (i32, i32) {
    %c0_i32 = arith.constant 0 : i32
    %c0_i32_0 = arith.constant 0 : i32
    %c0_i32_1 = arith.constant 0 : i32
    return %c0_i32, %c0_i32_0 : i32, i32
  }
  func.func @transform_2(%arg0: i32) -> (i32, i32) {
    %c0_i32 = arith.constant 0 : i32
    %c0_i32_0 = arith.constant 0 : i32
    %c0_i32_1 = arith.constant 0 : i32
    return %c0_i32, %c0_i32_0 : i32, i32
  }
  func.func @transform_3(%arg0: i32) -> (i32, i32) {
    %c0_i32 = arith.constant 0 : i32
    %c0_i32_0 = arith.constant 0 : i32
    %c0_i32_1 = arith.constant 0 : i32
    return %c0_i32, %c0_i32_0 : i32, i32
  }
  func.func @transform_4(%arg0: i32) -> (i32, i32) {
    %c0_i32 = arith.constant 0 : i32
    %c0_i32_0 = arith.constant 0 : i32
    %c0_i32_1 = arith.constant 0 : i32
    return %c0_i32, %c0_i32_0 : i32, i32
  }
  func.func @transform_5(%arg0: i32) -> (i32, i32) {
    %c0_i32 = arith.constant 0 : i32
    %c0_i32_0 = arith.constant 0 : i32
    return %arg0, %c0_i32 : i32, i32
  }
}

</mosaic_0001>

<bundles_post_ra>
// kernel: a2c_forward.1
= control target key start
LH: loop header
LB: loop body
LE: loop exit
PB: predicated region body
PF: predicated region fallthrough
CT: control target
= control target key end

     0   :  { %v261_v0 = vmov 0.0   ;;  %vm262_vm0 = vmmov 0   ;;  %vm38_vm1 = vcmask 130048   ;;  %vm195_vm2 = vcmask 64512   ;;  %s332_s1 = inlined_call_operand.vmem [shape: bf16[16,128], index: 1, kind: input, shape index: {}]   ;;  %s333_s0 = inlined_call_operand.vmem [shape: f32[8,16], index: 0, kind: input, shape index: {}]   ;;  %s334_s3 = inlined_call_operand.vmem [shape: bf16[128,8], index: 3, kind: input, shape index: {}]   ;;  %s335_s2 = inlined_call_operand.vmem [shape: f32[1,128], index: 2, kind: input, shape index: {}]   ;;  %s336_s4 = inlined_call_operand.vmem [shape: f32[1,8], index: 4, kind: input, shape index: {}]   ;;  %s337_s5 = inlined_call_operand.vmem [shape: f32[8,8], index: 5, kind: output, shape index: {}]  }
   0x1   :  { %224 = vmatprep.subr.bf16.mxu0 %v261_v0  ;;  %v252_v1 = vld [vmem:[%s332_s1] sm:$0xff]   ;;  %226 = vmatprep.mubr.msk.bf16.mxu0 %vm262_vm0, %v261_v0  ;;  %v253_v4 = vld [vmem:[%s334_s3 + $0x38] sm:$0xff]   ;;  %v254_v5 = vld [vmem:[%s334_s3 + $0x30] sm:$0xff]  }
   0x2   :  { %v21_v2 = vld [vmem:[%s333_s0] sm:$0xff]  ;;  %230 = vmatprep.subr.bf16.mxu1 %v261_v0  ;;  %246 = vmatprep.mubr.msk.bf16.mxu1 %vm262_vm0, %v261_v0  ;;  %v255_v6 = vld [vmem:[%s334_s3 + $0x28] sm:$0xff]   ;;  %v257_v8 = vld [vmem:[%s334_s3 + $0x18] sm:$0xff]  }
   0x3   :  { %225 = vmatpush3.bf16.msra.mxu0 %v252_v1  ;;  %v22_v3 = vpack.c.bf16 %v21_v2, %v21_v2  ;;  %231 = vmatpush3.bf16.msra.mxu1 %v253_v4  ;;  %v256_v7 = vld [vmem:[%s334_s3 + $0x20] sm:$0xff]   ;;  %v258_v9 = vld [vmem:[%s334_s3 + $0x10] sm:$0xff]   ;;  %v259_v10 = vld [vmem:[%s334_s3 + $0x8] sm:$0xff]  }
   0x4   :  { %232 = vmatprep.subr.bf16.mxu1 %v261_v0  ;;  %v260_v11 = vld [vmem:[%s334_s3] sm:$0xff]  }
   0x5   :  { %v201_v12 = vld [vmem:[%s335_s2] ss:$0 sm:$0xff] }
   0x6   :  { %227 = vmatmul.mubr.msk.bf16.vlgmr.msra.gmra.mxu0 %vm38_vm1, %v22_v3  ;;  %v204_v20 = vld [vmem:[%s336_s4] ss:$0 sm:$0xff] }
   0x7   :  { %233 = vmatpush3.bf16.msra.mxu1 %v254_v5 }
   0x8   :  { %234 = vmatprep.subr.bf16.mxu1 %v261_v0 }
   0xb   :  { %235 = vmatpush3.bf16.msra.mxu1 %v255_v6 }
   0xc   :  { %236 = vmatprep.subr.bf16.mxu1 %v261_v0 }
   0xf   :  { %237 = vmatpush3.bf16.msra.mxu1 %v256_v7 }
  0x10   :  { %238 = vmatprep.subr.bf16.mxu1 %v261_v0 }
  0x13   :  { %239 = vmatpush3.bf16.msra.mxu1 %v257_v8 }
  0x14   :  { %240 = vmatprep.subr.bf16.mxu1 %v261_v0 }
  0x17   :  { %241 = vmatpush3.bf16.msra.mxu1 %v258_v9 }
  0x18   :  { %242 = vmatprep.subr.bf16.mxu1 %v261_v0 }
  0x1b   :  { %243 = vmatpush3.bf16.msra.mxu1 %v259_v10 }
  0x1c   :  { %244 = vmatprep.subr.bf16.mxu1 %v261_v0 }
  0x1f   :  { %245 = vmatpush3.bf16.msra.mxu1 %v260_v11 }
  0xc6   :  { %v76_v13 = vpop.f32.mrf.mxu0 }
  0xc7   :  { %v77_v14 = vadd.f32 %v201_v12, %v76_v13 }
  0xc8   :  { %v228_v15 = vpop.f32.mrf.mxu0 }
  0xc9   :  { %v82_v16 = vmax.f32 %v77_v14, 0.0 }
  0xca   :  { %v79_v17 = vpop.f32.mrf.mxu0 }
  0xcb   :  { %v83_v18 = vpack.c.bf16 %v82_v16, %v82_v16 }
  0xcc   :  { %v229_v19 = vpop.f32.mrf.mxu0 }
  0xcd   :  { %247 = vmatmul.mubr.bf16.vlgmr.msra.gmra.mxu1 %v83_v18 }
 0x18d   :  { %v189_v21 = vpop.f32.mrf.mxu1 }
 0x18e   :  { %v190_v22 = vadd.f32 %v204_v20, %v189_v21 }
 0x18f   :  { %v248_v23 = vpop.f32.mrf.mxu1 }
 0x190   :  { %196 = vst.msk [vmem:[%s337_s5] sm:$0xff] %vm195_vm2, %v190_v22 }
 0x191   :  { %v192_v24 = vpop.f32.mrf.mxu1 }
 0x193   :  { %v249_v25 = vpop.f32.mrf.mxu1 }

</bundles_post_ra>
